<compile_context>
chip_gen: v5e
topology: v5e:2x2
jax: 0.10.0
libtpu: 0.0.40
codegen_flags: <defaults>
</compile_context>

<pallas_src>
import jax
import jax.numpy as jnp
from jax.experimental import pallas as pl
from jax.experimental.pallas import tpu as pltpu

C1 = 64            # channels of x[1] (full resolution skip)
C0 = 128           # channels of x[0] (half resolution)
C_IN = C1 + C0     # 192 channels after concat
C_RED = 12         # SE hidden (192 // 16)
C_OUT = 96         # LRConv output channels
NEG_SLOPE = 0.2


def _ynet2hu2_kernel(x1_ref, x0_ref, w1_ref, w0_ref, b_ref, o_ref):
    """One (batch, row-tile) step: SE-scaled 1x1 conv + fused 2x upsample/concat.

    x1_ref: (1, T, 4*C1)       bf16  quad-packed full-res features
    x0_ref: (1, T, C0)         bf16  half-res features (shared by each 2x2 quad)
    w1_ref: (1, 4*C1, 4*C_OUT) bf16  block-diag, SE-scaled conv weight (x1 part)
    w0_ref: (1, C0, C_OUT)     bf16  SE-scaled conv weight (x0 part, un-tiled)
    b_ref:  (1, 4*C_OUT)       f32   4x-tiled conv bias
    o_ref:  (1, T, 4*C_OUT)    bf16  quad-packed output (f32 accumulation inside)
    """
    # x1 branch: block-diagonal weight -> each quad lane chunk only sees its own pixel.
    y = jnp.dot(x1_ref[0], w1_ref[0], preferred_element_type=jnp.float32)
    # x0 branch: compute the (T, 96) product once, lane-replicate it into the 4
    # quad chunks (nearest 2x upsample).  The lane copies run on idle XLU/VPU
    # slots and avoid 4x-redundant MXU work from a tiled weight.
    z = jnp.dot(x0_ref[0], w0_ref[0], preferred_element_type=jnp.float32)
    y = y + jnp.concatenate([z, z, z, z], axis=-1)
    y = y + b_ref[...]
    o_ref[0] = jnp.where(y > 0, y, NEG_SLOPE * y).astype(o_ref.dtype)


def _pick_tile(total, target=2048):
    """Return (T, padded_total): T a multiple of 16 (<= target) dividing padded_total.

    Prefers an exact divisor of `total`; otherwise pads `total` up to a multiple
    of the target tile so VMEM use is always bounded and pipelining is preserved.
    """
    tgt = max(16, (min(target, total) // 16) * 16)
    if total % 16 == 0:
        for cand in range(tgt, 15, -16):
            if total % cand == 0:
                return cand, total
    padded = -(-total // tgt) * tgt
    return tgt, padded


def ynet2hu2_pallas(x0, x1, w1, w2, wc, bc):
    """x0: (B,128,H/2,W/2), x1: (B,64,H,W), NCHW -> (B,96,H,W) float32.

    w1: (192, 12)  SE squeeze FC (transposed, no bias)
    w2: (12, 192)  SE excite FC  (transposed, no bias)
    wc: (192, 96)  1x1 conv weight (transposed)
    bc: (1, 96)    1x1 conv bias
    """
    B, _, H, W = x1.shape
    H2, W2 = H // 2, W // 2
    assert H % 2 == 0 and W % 2 == 0
    assert x0.shape == (B, C0, H2, W2)
    assert x1.shape == (B, C1, H, W)

    # ---- SE scale (tiny, plain JAX): mean of nearest-upsampled x0 == mean x0.
    avg = jnp.concatenate(
        [jnp.mean(x1, axis=(2, 3)), jnp.mean(x0, axis=(2, 3))], axis=1)  # (B,192)
    h = jnp.maximum(avg @ w1, 0.0)
    s = jax.nn.sigmoid(h @ w2)                                           # (B,192)
    s1, s0 = s[:, :C1], s[:, C1:]

    # ---- fold SE scale into per-batch conv weights --------------------------
    # (x * s) @ wc == x @ (s[:, None] * wc)
    wc1s = s1[:, :, None] * wc[None, :C1]            # (B, 64, 96)
    wc0s = s0[:, :, None] * wc[None, C1:]            # (B, 128, 96)
    eye4 = jnp.eye(4, dtype=wc.dtype)
    # block-diagonal: quad pixel q only sees its own 64 x1 channels
    w1q = (eye4[None, :, None, :, None] * wc1s[:, None, :, None, :]
           ).reshape(B, 4 * C1, 4 * C_OUT).astype(jnp.bfloat16)          # (B,256,384)
    # x0 weight stays un-tiled; the quad replication happens in-kernel on lanes.
    w0s = wc0s.astype(jnp.bfloat16)                                      # (B,128,96)
    b4 = jnp.tile(bc.reshape(1, C_OUT), (1, 4)).astype(jnp.float32)      # (1,384)

    # ---- quad-pack activations (one strided copy each, bf16 cast fused) ----
    # x1: (B,64,H,W) -> (B, H2*W2, 4*64), lane chunk (2j+k) holds channels of
    # full-res pixel (2*h2+j, 2*w2+k); x0: (B,128,H2,W2) -> (B, H2*W2, 128).
    x1q = (x1.reshape(B, C1, H2, 2, W2, 2)
              .transpose(0, 2, 4, 3, 5, 1)
              .reshape(B, H2 * W2, 4 * C1)
              .astype(jnp.bfloat16))
    x0q = (x0.transpose(0, 2, 3, 1)
              .reshape(B, H2 * W2, C0)
              .astype(jnp.bfloat16))

    n_rows = H2 * W2
    target = 2048                       # ~6.5 MiB/step incl. double buffers
    if B == 1:
        # keep >= 2 grid steps so the grid can shard across v7x's 2 TensorCores
        target = min(target, max(16, (n_rows // 2) // 16 * 16))
    T, n_rows_p = _pick_tile(n_rows, target=target)
    n_tiles = n_rows_p // T
    if n_rows_p != n_rows:
        pad = n_rows_p - n_rows
        x1q = jnp.pad(x1q, ((0, 0), (0, pad), (0, 0)))
        x0q = jnp.pad(x0q, ((0, 0), (0, pad), (0, 0)))

    flops = 2 * B * n_rows_p * (4 * C1 * 4 * C_OUT + C0 * C_OUT)
    bytes_accessed = (2 * (x1q.size + x0q.size + w1q.size + w0s.size)
                      + 4 * b4.size
                      + 2 * B * n_rows_p * 4 * C_OUT)

    outq = pl.pallas_call(
        _ynet2hu2_kernel,
        out_shape=jax.ShapeDtypeStruct((B, n_rows_p, 4 * C_OUT), jnp.bfloat16),
        grid_spec=pltpu.PrefetchScalarGridSpec(
            num_scalar_prefetch=0,
            grid=(B, n_tiles),
            in_specs=[
                pl.BlockSpec((1, T, 4 * C1), lambda b, i: (b, i, 0)),
                pl.BlockSpec((1, T, C0), lambda b, i: (b, i, 0)),
                pl.BlockSpec((1, 4 * C1, 4 * C_OUT), lambda b, i: (b, 0, 0)),
                pl.BlockSpec((1, C0, C_OUT), lambda b, i: (b, 0, 0)),
                pl.BlockSpec((1, 4 * C_OUT), lambda b, i: (0, 0)),
            ],
            out_specs=pl.BlockSpec((1, T, 4 * C_OUT), lambda b, i: (b, i, 0)),
        ),
        compiler_params=pltpu.CompilerParams(
            dimension_semantics=("parallel", "parallel")),
        cost_estimate=pl.CostEstimate(
            flops=flops, transcendentals=0, bytes_accessed=bytes_accessed),
    )(x1q, x0q, w1q, w0s, b4)

    if n_rows_p != n_rows:
        outq = outq[:, :n_rows]

    # ---- unpack quads back to NCHW (bf16->f32 cast fused into this pass) ----
    # TODO(synk): if the consumer accepts the quad-packed layout, return `outq`
    #             and delete this pass (it is the single largest e2e HBM cost).
    out = (outq.reshape(B, H2, W2, 2, 2, C_OUT)
               .transpose(0, 5, 1, 3, 2, 4)
               .reshape(B, C_OUT, H, W)
               .astype(jnp.float32))
    return out


def _reference(x0, x1, w1, w2, wc, bc):
    """Pure-JAX f32 reference of the same forward pass."""
    x0_up = jnp.repeat(jnp.repeat(x0, 2, axis=2), 2, axis=3)
    xc = jnp.concatenate([x1, x0_up], axis=1)                 # (B,192,H,W)
    avg = jnp.mean(xc, axis=(2, 3))                           # (B,192)
    h = jnp.maximum(avg @ w1, 0.0)                            # (B,12)
    s = jax.nn.sigmoid(h @ w2)                                # (B,192)
    xs = xc * s[:, :, None, None]
    y = jnp.einsum("bchw,co->bohw", xs, wc) + bc.reshape(1, C_OUT, 1, 1)
    return jnp.where(y > 0, y, NEG_SLOPE * y)


if __name__ == "__main__":
    key = jax.random.PRNGKey(0)
    k0, k1, kw1, kw2, kwc, kbc = jax.random.split(key, 6)

    B, H, W = 2, 16, 16
    # x[0]: deeper / half-resolution features (128 ch), x[1]: skip features (64 ch)
    x0 = jax.random.normal(k0, (B, 128, H // 2, W // 2), dtype=jnp.float32)
    x1 = jax.random.normal(k1, (B, 64, H, W), dtype=jnp.float32)

    # Parameters stored transposed, ready for right-multiply.
    w1 = jax.random.normal(kw1, (C_IN, C_RED), dtype=jnp.float32) * 0.05   # SE fc1^T
    w2 = jax.random.normal(kw2, (C_RED, C_IN), dtype=jnp.float32) * 0.05   # SE fc2^T
    wc = jax.random.normal(kwc, (C_IN, C_OUT), dtype=jnp.float32) * 0.05   # conv1x1 w^T
    bc = jax.random.normal(kbc, (1, C_OUT), dtype=jnp.float32) * 0.05      # conv bias

    out = jax.jit(ynet2hu2_pallas)(x0, x1, w1, w2, wc, bc)
    jax.block_until_ready(out)

    ref = _reference(x0, x1, w1, w2, wc, bc)
    assert out.shape == (B, C_OUT, H, W), out.shape
    # bf16 MXU inputs + bf16 kernel output (f32 accumulate) -> relaxed tolerance
    max_err = float(jnp.max(jnp.abs(out - ref)))
    assert jnp.allclose(out, ref, atol=5e-2, rtol=5e-2), max_err

    print("KERNEL_OK")
</pallas_src>

<mosaic_0001>
module attributes {stable_mosaic.version = 11 : i64} {
  func.func @_ynet2hu2_kernel(%arg0: i32, %arg1: i32, %arg2: memref<1x64x256xbf16, #tpu.memory_space<vmem>>, %arg3: memref<1x64x128xbf16, #tpu.memory_space<vmem>>, %arg4: memref<1x256x384xbf16, #tpu.memory_space<vmem>>, %arg5: memref<1x128x96xbf16, #tpu.memory_space<vmem>>, %arg6: memref<1x384xf32, #tpu.memory_space<vmem>>, %arg7: memref<1x64x384xbf16, #tpu.memory_space<vmem>>) attributes {dimension_semantics = [#tpu.dimension_semantics<parallel>, #tpu.dimension_semantics<parallel>], iteration_bounds = array<i64: 2, 1>, scalar_prefetch = 0 : i64, scratch_operands = 0 : i64, tpu.core_type = #tpu.core_type<tc>, window_params = [{transform_indices = @transform_0, window_bounds = array<i64: 1, 64, 256>}, {transform_indices = @transform_1, window_bounds = array<i64: 1, 64, 128>}, {transform_indices = @transform_2, window_bounds = array<i64: 1, 256, 384>}, {transform_indices = @transform_3, window_bounds = array<i64: 1, 128, 96>}, {pipeline_mode = #tpu.pipeline_mode<synchronous>, transform_indices = @transform_4, window_bounds = array<i64: 1, 384>}, {transform_indices = @transform_5, window_bounds = array<i64: 1, 64, 384>}]} {
    %c0 = arith.constant 0 : index
    %c0_0 = arith.constant 0 : index
    %c0_1 = arith.constant 0 : index
    %0 = vector.load %arg2[%c0, %c0_0, %c0_1] : memref<1x64x256xbf16, #tpu.memory_space<vmem>>, vector<1x64x256xbf16>
    %1 = vector.shape_cast %0 : vector<1x64x256xbf16> to vector<64x256xbf16>
    %c0_2 = arith.constant 0 : index
    %c0_3 = arith.constant 0 : index
    %c0_4 = arith.constant 0 : index
    %2 = vector.load %arg4[%c0_2, %c0_3, %c0_4] : memref<1x256x384xbf16, #tpu.memory_space<vmem>>, vector<1x256x384xbf16>
    %3 = vector.shape_cast %2 : vector<1x256x384xbf16> to vector<256x384xbf16>
    %cst = arith.constant dense<0.000000e+00> : vector<64x384xf32>
    %4 = tpu.matmul %1, %3, %cst {dimension_numbers = #tpu.dot_dimension_numbers<[1], [0], [0], [1], [0, 0, 1, 1], [], []>} : vector<64x256xbf16>, vector<256x384xbf16>, vector<64x384xf32> -> vector<64x384xf32>
    %c0_5 = arith.constant 0 : index
    %c0_6 = arith.constant 0 : index
    %c0_7 = arith.constant 0 : index
    %5 = vector.load %arg3[%c0_5, %c0_6, %c0_7] : memref<1x64x128xbf16, #tpu.memory_space<vmem>>, vector<1x64x128xbf16>
    %6 = vector.shape_cast %5 : vector<1x64x128xbf16> to vector<64x128xbf16>
    %c0_8 = arith.constant 0 : index
    %c0_9 = arith.constant 0 : index
    %c0_10 = arith.constant 0 : index
    %7 = vector.load %arg5[%c0_8, %c0_9, %c0_10] : memref<1x128x96xbf16, #tpu.memory_space<vmem>>, vector<1x128x96xbf16>
    %8 = vector.shape_cast %7 : vector<1x128x96xbf16> to vector<128x96xbf16>
    %cst_11 = arith.constant dense<0.000000e+00> : vector<64x96xf32>
    %9 = tpu.matmul %6, %8, %cst_11 {dimension_numbers = #tpu.dot_dimension_numbers<[1], [0], [0], [1], [0, 0, 1, 1], [], []>} : vector<64x128xbf16>, vector<128x96xbf16>, vector<64x96xf32> -> vector<64x96xf32>
    %10 = tpu.concatenate %9, %9, %9, %9 in 1 : vector<64x96xf32>, vector<64x96xf32>, vector<64x96xf32>, vector<64x96xf32> -> vector<64x384xf32>
    %11 = arith.addf %4, %10 : vector<64x384xf32>
    %c0_12 = arith.constant 0 : index
    %c0_13 = arith.constant 0 : index
    %12 = vector.load %arg6[%c0_12, %c0_13] : memref<1x384xf32, #tpu.memory_space<vmem>>, vector<1x384xf32>
    %13 = vector.broadcast %12 : vector<1x384xf32> to vector<64x384xf32>
    %14 = arith.addf %11, %13 : vector<64x384xf32>
    %cst_14 = arith.constant 0.000000e+00 : f32
    %15 = vector.broadcast %cst_14 : f32 to vector<64x384xf32>
    %16 = arith.cmpf ogt, %14, %15 : vector<64x384xf32>
    %cst_15 = arith.constant 2.000000e-01 : f32
    %17 = vector.broadcast %cst_15 : f32 to vector<64x384xf32>
    %18 = arith.mulf %17, %14 : vector<64x384xf32>
    %19 = arith.select %16, %14, %18 : vector<64x384xi1>, vector<64x384xf32>
    %20 = arith.truncf %19 : vector<64x384xf32> to vector<64x384xbf16>
    %c0_16 = arith.constant 0 : index
    %c0_17 = arith.constant 0 : index
    %c0_18 = arith.constant 0 : index
    %21 = vector.load %arg7[%c0_16, %c0_17, %c0_18] : memref<1x64x384xbf16, #tpu.memory_space<vmem>>, vector<1x64x384xbf16>
    %22 = vector.shape_cast %21 : vector<1x64x384xbf16> to vector<64x384xbf16>
    %23 = vector.shape_cast %20 : vector<64x384xbf16> to vector<1x64x384xbf16>
    tpu.vector_store %arg7[%c0_16, %c0_17, %c0_18], %23 {strides = array<i32>} : memref<1x64x384xbf16, #tpu.memory_space<vmem>>, vector<1x64x384xbf16>,
    return
  }
  func.func @transform_0(%arg0: i32, %arg1: i32) -> (i32, i32, i32) {
    %c0_i32 = arith.constant 0 : i32
    %c0_i32_0 = arith.constant 0 : i32
    return %arg0, %arg1, %c0_i32 : i32, i32, i32
  }
  func.func @transform_1(%arg0: i32, %arg1: i32) -> (i32, i32, i32) {
    %c0_i32 = arith.constant 0 : i32
    %c0_i32_0 = arith.constant 0 : i32
    return %arg0, %arg1, %c0_i32 : i32, i32, i32
  }
  func.func @transform_2(%arg0: i32, %arg1: i32) -> (i32, i32, i32) {
    %c0_i32 = arith.constant 0 : i32
    %c0_i32_0 = arith.constant 0 : i32
    %c0_i32_1 = arith.constant 0 : i32
    return %arg0, %c0_i32, %c0_i32_0 : i32, i32, i32
  }
  func.func @transform_3(%arg0: i32, %arg1: i32) -> (i32, i32, i32) {
    %c0_i32 = arith.constant 0 : i32
    %c0_i32_0 = arith.constant 0 : i32
    %c0_i32_1 = arith.constant 0 : i32
    return %arg0, %c0_i32, %c0_i32_0 : i32, i32, i32
  }
  func.func @transform_4(%arg0: i32, %arg1: i32) -> (i32, i32) {
    %c0_i32 = arith.constant 0 : i32
    %c0_i32_0 = arith.constant 0 : i32
    %c0_i32_1 = arith.constant 0 : i32
    return %c0_i32, %c0_i32_0 : i32, i32
  }
  func.func @transform_5(%arg0: i32, %arg1: i32) -> (i32, i32, i32) {
    %c0_i32 = arith.constant 0 : i32
    %c0_i32_0 = arith.constant 0 : i32
    return %arg0, %arg1, %c0_i32 : i32, i32, i32
  }
}

</mosaic_0001>

<bundles_post_ra>
// kernel: ynet2hu2_pallas.1
= control target key start
LH: loop header
LB: loop body
LE: loop exit
PB: predicated region body
PF: predicated region fallthrough
CT: control target
= control target key end

     0   :  { %s1861_s18 = smov 0   ;;  %s1863_s19 = smov 0   ;;  %s2357_s0 = inlined_call_operand.vmem [shape: bf16[2,64,256], index: 0, kind: input, shape index: {}]   ;;  %s2358_s1 = inlined_call_operand.vmem [shape: bf16[2,64,128], index: 1, kind: input, shape index: {}]   ;;  %s2359_s2 = inlined_call_operand.vmem [shape: bf16[2,256,384], index: 2, kind: input, shape index: {}]   ;;  %s2360_s3 = inlined_call_operand.vmem [shape: bf16[2,128,96], index: 3, kind: input, shape index: {}]   ;;  %s2361_s4 = inlined_call_operand.vmem [shape: f32[1,384], index: 4, kind: input, shape index: {}]   ;;  %s2362_s5 = inlined_call_operand.vmem [shape: bf16[2,64,384], index: 5, kind: output, shape index: {}]  }
   0x1   :  { %s1865_s20 = smov 0  }
   0x2 LB: > { %s27_s21 = sadd.s32 1, %s1822_s19  ;;  %p1397_p0 = scmp.ge.s32.totalorder %s1826_s20, 1  ;;  %s1826_s20 = sphi %s1865_s20, %s15_s20   ;;  %s1822_s19 = sphi %s1863_s19, %s2364_s19   ;;  %s1818_s18 = sphi %s1861_s18, %s2363_s18  }
   0x3   : > { %p29_p1 = scmp.ge.s32.totalorder %s27_s21, 2  ;;  %p246_p2 = scmp.lt.s32.totalorder %s1826_s20, 3 }
   0x5   : > { %s2366_s21 = smov (%p29_p1, %s27_s21), 0  ;;  %p247_p3 = pnand %p1397_p0, %p246_p2 }
   0x6   : > { %p304_p4 = scmp.lt.s32.totalorder (!%p247_p3), %s1818_s18, 1  ;;  %s1828_s12 = smov (!%p247_p3), 32  }
   0x7   : > { %250 = sbr.rel (%p247_p3) target bundleno = 363 (0x16b), region = 40  ;;  %s1829_s13 = smov (!%p247_p3), 64  }
   0x8   : > { %s1830_s14 = smov (!%p247_p3), 96  }
   0xc   : > { %s2368_s18 = smov (!%p304_p4, %s1818_s18), 1  ;;  %vm622_vm0 = vcmask 785408   ;;  %vm640_vm1 = vcmask 261120   ;;  %vm631_vm2 = vcmask 523264  }
   0xd   : > { %s1680_s22 = sshll.u32 %s2368_s18, 6  ;;  %s1775_s23 = smul.u32 384, %s2368_s18 }
   0xe   : > { %s1888_s26 = scalar_lea.vmem %s2360_s3, %s1680_s22  ;;  %s1681_s30 = sshll.u32 %s2368_s18, 5 }
   0xf   : > { %s1893_s29 = scalar_lea.vmem %s2359_s2, %s1775_s23  ;;  %v1750_v0 = vld [vmem:[%s1888_s26 + $0x38] sm:$0xff]  ;;  %v1749_v1 = vld [vmem:[%s1888_s26 + $0x30] sm:$0xff]  ;;  %v1748_v7 = vld [vmem:[%s1888_s26 + $0x28] sm:$0xff]  ;;  %s1933_s8 = scalar_lea.vmem %s2358_s1, %s1681_s30 }
  0x10   : > { %513 = vmatpush.bf16.msra.mxu0 %v1750_v0  ;;  %1751 = vmatpush.bf16.msra.mxu3 %v1750_v0  ;;  %v1668_v2 = vld [vmem:[%s1893_s29 + $0x168] sm:$0xf]  ;;  %v1737_v3 = vld [vmem:[%s1893_s29 + $0x170] sm:$0xf0]  ;;  %v1656_v5 = vld [vmem:[%s1893_s29 + $0x150] sm:$0xf]  ;;  %s1940_s11 = scalar_lea.vmem %s2357_s0, %s1680_s22 }
  0x11   : > { %v1669_v4 = vor.u32 %v1737_v3, %v1668_v2  ;;  %v1734_v6 = vld [vmem:[%s1893_s29 + $0x158] sm:$0xf0]  ;;  %v1644_v9 = vld [vmem:[%s1893_s29 + $0x138] sm:$0xf]  ;;  %v1731_v10 = vld [vmem:[%s1893_s29 + $0x140] sm:$0xf0] }
  0x12   : > { %v1657_v8 = vor.u32 %v1734_v6, %v1656_v5  ;;  %v1572_v11 = vld [vmem:[%s1893_s29 + $0xa8] sm:$0xf]  ;;  %v1713_v12 = vld [vmem:[%s1893_s29 + $0xb0] sm:$0xf0]  ;;  %v1645_v14 = vor.u32 %v1731_v10, %v1644_v9  ;;  %v1747_v15 = vld [vmem:[%s1888_s26 + $0x20] sm:$0xff]  ;;  %s1776_s17 = smul.u32 96, %s2368_s18 }
  0x13   : > { %974 = vmatpush.bf16.msra.mxu2 %v1669_v4  ;;  %v1573_v13 = vor.u32 %v1713_v12, %v1572_v11  ;;  %v1632_v16 = vld [vmem:[%s1893_s29 + $0x120] sm:$0xf]  ;;  %v1728_v17 = vld [vmem:[%s1893_s29 + $0x128] sm:$0xf0]  ;;  %v1746_v19 = vld [vmem:[%s1888_s26 + $0x18] sm:$0xff] }
  0x14   : > { %514 = vmatpush.bf16.msra.mxu0 %v1749_v1  ;;  %1752 = vmatpush.bf16.msra.mxu3 %v1749_v1  ;;  %v1633_v18 = vor.u32 %v1728_v17, %v1632_v16  ;;  %v1620_v20 = vld [vmem:[%s1893_s29 + $0x108] sm:$0xf]  ;;  %v1725_v21 = vld [vmem:[%s1893_s29 + $0x110] sm:$0xf0]  ;;  %v1560_v22 = vld [vmem:[%s1893_s29 + $0x90] sm:$0xf]  ;;  %s2233_s18 = scalar_lea.vmem %s2362_s5, %s1776_s17 }
  0x15   : > { %945 = vmatpush.bf16.msra.mxu1 %v1573_v13  ;;  %v1710_v23 = vld [vmem:[%s1893_s29 + $0x98] sm:$0xf0]  ;;  %v1621_v25 = vor.u32 %v1725_v21, %v1620_v20  ;;  %v1548_v26 = vld [vmem:[%s1893_s29 + $0x78] sm:$0xf]  ;;  %v1707_v27 = vld [vmem:[%s1893_s29 + $0x80] sm:$0xf0] }
  0x16   : > { %v1561_v24 = vor.u32 %v1710_v23, %v1560_v22  ;;  %v1745_v28 = vld [vmem:[%s1888_s26 + $0x10] sm:$0xff]  ;;  %v1722_v30 = vld [vmem:[%s1893_s29 + $0xf8] sm:$0xf0]  ;;  %v1549_v31 = vor.u32 %v1707_v27, %v1548_v26  ;;  %v1536_v32 = vld [vmem:[%s1893_s29 + $0x60] sm:$0xf] }
  0x17   : > { %975 = vmatpush.bf16.msra.mxu2 %v1657_v8  ;;  %v1608_v29 = vld [vmem:[%s1893_s29 + $0xf0] sm:$0xf]  ;;  %v1704_v33 = vld [vmem:[%s1893_s29 + $0x68] sm:$0xf0]  ;;  %v1596_v36 = vld [vmem:[%s1893_s29 + $0xd8] sm:$0xf] }
  0x18   : > { %515 = vmatpush.bf16.msra.mxu0 %v1748_v7  ;;  %1753 = vmatpush.bf16.msra.mxu3 %v1748_v7  ;;  %v1609_v34 = vor.u32 %v1722_v30, %v1608_v29  ;;  %v1744_v35 = vld [vmem:[%s1888_s26 + $0x8] sm:$0xff]  ;;  %v1719_v37 = vld [vmem:[%s1893_s29 + $0xe0] sm:$0xf0]  ;;  %v1537_v39 = vor.u32 %v1704_v33, %v1536_v32  ;;  %v1670_v40 = vld [vmem:[%s1893_s29 + $0x174] sm:$0xf0] }
  0x19   : > { %946 = vmatpush.bf16.msra.mxu1 %v1561_v24  ;;  %v1736_v38 = vld [vmem:[%s1893_s29 + $0x16c] sm:$0xf]  ;;  %v1524_v41 = vld [vmem:[%s1893_s29 + $0x48] sm:$0xf]  ;;  %v1701_v42 = vld [vmem:[%s1893_s29 + $0x50] sm:$0xf0]  ;;  %v1597_v43 = vor.u32 %v1719_v37, %v1596_v36 }
  0x1a   : > { %v1743_v44 = vld [vmem:[%s1888_s26] sm:$0xff]  ;;  %v1716_v46 = vld [vmem:[%s1893_s29 + $0xc8] sm:$0xf0]  ;;  %v1673_v47 = vor.u32 %v1736_v38, %v1670_v40  ;;  %v1733_v48 = vld [vmem:[%s1893_s29 + $0x154] sm:$0xf]  ;;  %v1525_v49 = vor.u32 %v1701_v42, %v1524_v41 }
  0x1b   : > { %976 = vmatpush.bf16.msra.mxu2 %v1645_v14  ;;  %v1584_v45 = vld [vmem:[%s1893_s29 + $0xc0] sm:$0xf]  ;;  %v1512_v51 = vld [vmem:[%s1893_s29 + $0x30] sm:$0xf]  ;;  %v1698_v52 = vld [vmem:[%s1893_s29 + $0x38] sm:$0xf0] }
  0x1c   : > { %516 = vmatpush.bf16.msra.mxu0 %v1747_v15  ;;  %1754 = vmatpush.bf16.msra.mxu3 %v1747_v15  ;;  %v1658_v50 = vld [vmem:[%s1893_s29 + $0x15c] sm:$0xf0]  ;;  %v1741_v54 = vld [vmem:[%s1933_s8 + $0x10] sm:$0xff]  ;;  %v1585_v55 = vor.u32 %v1716_v46, %v1584_v45  ;;  %v1683_v56 = vld [vmem:[%s1940_s11 + $0x4] sm:$0xf]  ;;  %v1513_v60 = vor.u32 %v1698_v52, %v1512_v51 }
  0x1d   : > { %947 = vmatpush.bf16.msra.mxu1 %v1549_v31  ;;  %v1739_v53 = vld [vmem:[%s1933_s8] sm:$0xff]  ;;  %v1458_v57 = vld [vmem:[%s1940_s11 + $0x8] sm:$0xf0]  ;;  %v1661_v58 = vor.u32 %v1733_v48, %v1658_v50  ;;  %v1730_v59 = vld [vmem:[%s1893_s29 + $0x13c] sm:$0xf] }
  0x1e   : > { %v1646_v61 = vld [vmem:[%s1893_s29 + $0x144] sm:$0xf0]  ;;  %v1500_v62 = vld [vmem:[%s1893_s29 + $0x18] sm:$0xf]  ;;  %v1695_v63 = vld [vmem:[%s1893_s29 + $0x20] sm:$0xf0]  ;;  %v1956_v0 = vor.u32 %v1683_v56, %v1458_v57 }
  0x1f   : > { %977 = vmatpush.bf16.msra.mxu2 %v1633_v18  ;;  %v1712_v1 = vld [vmem:[%s1893_s29 + $0xac] sm:$0xf]  ;;  %v1574_v2 = vld [vmem:[%s1893_s29 + $0xb4] sm:$0xf0]  ;;  %v1649_v4 = vor.u32 %v1730_v59, %v1646_v61  ;;  %v1727_v5 = vld [vmem:[%s1893_s29 + $0x124] sm:$0xf]  ;;  %v1501_v6 = vor.u32 %v1695_v63, %v1500_v62 }
  0x20   : > { %517 = vmatpush.bf16.msra.mxu0 %v1746_v19  ;;  %1755 = vmatpush.bf16.msra.mxu3 %v1746_v19  ;;  %v1577_v3 = vor.u32 %v1712_v1, %v1574_v2  ;;  %v1634_v7 = vld [vmem:[%s1893_s29 + $0x12c] sm:$0xf0]  ;;  %v1488_v8 = vld [vmem:[%s1893_s29] sm:$0xf]  ;;  %v1692_v9 = vld [vmem:[%s1893_s29 + $0x8] sm:$0xf0] }
  0x21   : > { %948 = vmatpush.bf16.msra.mxu1 %v1537_v39  ;;  %v1709_v10 = vld [vmem:[%s1893_s29 + $0x94] sm:$0xf]  ;;  %v1562_v11 = vld [vmem:[%s1893_s29 + $0x9c] sm:$0xf0]  ;;  %v1676_v12 = vld [vmem:[%s1893_s29 + $0x170] sm:$0xf]  ;;  %v1637_v17 = vor.u32 %v1727_v5, %v1634_v7  ;;  %v1489_v18 = vor.u32 %v1692_v9, %v1488_v8 }
  0x22   : > { %v1456_v13 = vld [vmem:[%s1940_s11] sm:$0xf]  ;;  %v1684_v14 = vld [vmem:[%s1940_s11 + $0x4] sm:$0xf0]  ;;  %v1565_v15 = vor.u32 %v1709_v10, %v1562_v11  ;;  %v1738_v16 = vld [vmem:[%s1893_s29 + $0x178] sm:$0xf0] }
  0x23   : > { %978 = vmatpush.bf16.msra.mxu2 %v1621_v25  ;;  %v1971_v19 = vor.u32 %v1738_v16, %v1676_v12  ;;  %v1706_v20 = vld [vmem:[%s1893_s29 + $0x7c] sm:$0xf]  ;;  %v1550_v21 = vld [vmem:[%s1893_s29 + $0x84] sm:$0xf0]  ;;  %v1664_v22 = vld [vmem:[%s1893_s29 + $0x158] sm:$0xf]  ;;  %v1984_v30 = vor.u32 %v1684_v14, %v1456_v13 }
  0x24   : > { %518 = vmatpush.bf16.msra.mxu0 %v1745_v28  ;;  %1756 = vmatpush.bf16.msra.mxu3 %v1745_v28  ;;  %v1724_v23 = vld [vmem:[%s1893_s29 + $0x10c] sm:$0xf]  ;;  %v1622_v24 = vld [vmem:[%s1893_s29 + $0x114] sm:$0xf0]  ;;  %v1553_v25 = vor.u32 %v1706_v20, %v1550_v21  ;;  %v1735_v26 = vld [vmem:[%s1893_s29 + $0x160] sm:$0xf0] }
  0x25   : > { %949 = vmatpush.bf16.msra.mxu1 %v1525_v49  ;;  %v1980_v27 = vor.u32 %v1735_v26, %v1664_v22  ;;  %v1703_v28 = vld [vmem:[%s1893_s29 + $0x64] sm:$0xf]  ;;  %v1538_v29 = vld [vmem:[%s1893_s29 + $0x6c] sm:$0xf0]  ;;  %v1625_v31 = vor.u32 %v1724_v23, %v1622_v24  ;;  %v1652_v32 = vld [vmem:[%s1893_s29 + $0x140] sm:$0xf] }
  0x26   : > { %v1732_v33 = vld [vmem:[%s1893_s29 + $0x148] sm:$0xf0]  ;;  %v1541_v36 = vor.u32 %v1703_v28, %v1538_v29  ;;  %v1742_v38 = vld [vmem:[%s1933_s8 + $0x18] sm:$0xff]  ;;  %v1685_v39 = vld [vmem:[%s1940_s11 + $0x14] sm:$0xf] }
  0x27   : > { %979 = vmatpush.bf16.msra.mxu2 %v1609_v34  ;;  %v1721_v34 = vld [vmem:[%s1893_s29 + $0xf4] sm:$0xf]  ;;  %v1740_v37 = vld [vmem:[%s1933_s8 + $0x8] sm:$0xff]  ;;  %v1466_v40 = vld [vmem:[%s1940_s11 + $0x18] sm:$0xf0]  ;;  %v1996_v41 = vor.u32 %v1732_v33, %v1652_v32 }
  0x28   : > { %519 = vmatpush.bf16.msra.mxu0 %v1744_v35  ;;  %1757 = vmatpush.bf16.msra.mxu3 %v1744_v35  ;;  %v1610_v35 = vld [vmem:[%s1893_s29 + $0xfc] sm:$0xf0]  ;;  %v2000_v45 = vor.u32 %v1685_v39, %v1466_v40  ;;  %v1700_v46 = vld [vmem:[%s1893_s29 + $0x4c] sm:$0xf]  ;;  %v1640_v48 = vld [vmem:[%s1893_s29 + $0x128] sm:$0xf] }
  0x29   : > { %950 = vmatpush.bf16.msra.mxu1 %v1513_v60  ;;  %v1613_v42 = vor.u32 %v1721_v34, %v1610_v35  ;;  %v1729_v50 = vld [vmem:[%s1893_s29 + $0x130] sm:$0xf0]  ;;  %v1514_v56 = vld [vmem:[%s1893_s29 + $0x3c] sm:$0xf0]  ;;  %v1628_v57 = vld [vmem:[%s1893_s29 + $0x110] sm:$0xf] }
  0x2a   : > { %v2007_v52 = vor.u32 %v1729_v50, %v1640_v48  ;;  %v1726_v59 = vld [vmem:[%s1893_s29 + $0x118] sm:$0xf0]  ;;  %v1580_v60 = vld [vmem:[%s1893_s29 + $0xb0] sm:$0xf]  ;;  %v1686_v1 = vld [vmem:[%s1940_s11 + $0x14] sm:$0xf0] }
  0x2b   : > { %980 = vmatpush.bf16.msra.mxu2 %v1597_v43  ;;  %v1718_v43 = vld [vmem:[%s1893_s29 + $0xdc] sm:$0xf]  ;;  %v1464_v63 = vld [vmem:[%s1940_s11 + $0x10] sm:$0xf]  ;;  %v2021_v2 = vor.u32 %v1726_v59, %v1628_v57  ;;  %v1502_v5 = vld [vmem:[%s1893_s29 + $0x24] sm:$0xf0] }
  0x2c   : > { %520 = vmatpush.bf16.msra.mxu0 %v1743_v44  ;;  %1758 = vmatpush.bf16.msra.mxu3 %v1743_v44  ;;  %v1598_v44 = vld [vmem:[%s1893_s29 + $0xe4] sm:$0xf0]  ;;  %v1714_v61 = vld [vmem:[%s1893_s29 + $0xb8] sm:$0xf0]  ;;  %v1723_v7 = vld [vmem:[%s1893_s29 + $0x100] sm:$0xf0]  ;;  %v2030_v12 = vor.u32 %v1686_v1, %v1464_v63 }
  0x2d   : > { %951 = vmatpush.bf16.msra.mxu1 %v1501_v6  ;;  %v1601_v51 = vor.u32 %v1718_v43, %v1598_v44  ;;  %v1616_v6 = vld [vmem:[%s1893_s29 + $0xf8] sm:$0xf]  ;;  %v1691_v9 = vld [vmem:[%s1893_s29 + $0x4] sm:$0xf]  ;;  %v1490_v10 = vld [vmem:[%s1893_s29 + $0xc] sm:$0xf0] }
  0x2e   : > { %v1568_v11 = vld [vmem:[%s1893_s29 + $0x98] sm:$0xf]  ;;  %v2033_v13 = vor.u32 %v1723_v7, %v1616_v6  ;;  %v1711_v14 = vld [vmem:[%s1893_s29 + $0xa0] sm:$0xf0]  ;;  %v1604_v16 = vld [vmem:[%s1893_s29 + $0xe0] sm:$0xf] }
  0x2f   : > { %521 = vmatmul.bf16.vlgmr.msra.gmra.mxu0 %v1739_v53  ;;  %531 = vmatmul.bf16.vlgmr.msra.gmra.mxu3 %v1741_v54  ;;  %v1715_v53 = vld [vmem:[%s1893_s29 + $0xc4] sm:$0xf]  ;;  %v1586_v54 = vld [vmem:[%s1893_s29 + $0xcc] sm:$0xf0]  ;;  %v1474_v21 = vld [vmem:[%s1940_s11 + $0x28] sm:$0xf0] }
  0x30   : > { %1032 = vmatpush.bf16.msrb.mxu0 %v1673_v47  ;;  %981 = vmatpush.bf16.msra.mxu2 %v1585_v55  ;;  %v1526_v47 = vld [vmem:[%s1893_s29 + $0x54] sm:$0xf0]  ;;  %v1697_v55 = vld [vmem:[%s1893_s29 + $0x34] sm:$0xf]  ;;  %v1589_v62 = vor.u32 %v1715_v53, %v1586_v54  ;;  %v1687_v20 = vld [vmem:[%s1940_s11 + $0x24] sm:$0xf] }
  0x31   : > { %1003 = vmatpush.bf16.msrb.mxu3 %v1577_v3  ;;  %952 = vmatpush.bf16.msra.mxu1 %v1489_v18  ;;  %v1529_v49 = vor.u32 %v1700_v46, %v1526_v47  ;;  %v1581_v3 = vor.u32 %v1714_v61, %v1580_v60  ;;  %v1493_v18 = vor.u32 %v1691_v9, %v1490_v10  ;;  %v1556_v24 = vld [vmem:[%s1893_s29 + $0x80] sm:$0xf]  ;;  %v1592_v26 = vld [vmem:[%s1893_s29 + $0xc8] sm:$0xf]  ;;  %v1717_v29 = vld [vmem:[%s1893_s29 + $0xd0] sm:$0xf0] }
  0x32   : > { %v2043_v23 = vor.u32 %v1687_v20, %v1474_v21  ;;  %v1544_v32 = vld [vmem:[%s1893_s29 + $0x68] sm:$0xf]  ;;  %v1705_v33 = vld [vmem:[%s1893_s29 + $0x70] sm:$0xf0]  ;;  %v1532_v34 = vld [vmem:[%s1893_s29 + $0x50] sm:$0xf] }
  0x33   : > { %982 = vmatmul.bf16.vlgmr.msra.gmra.mxu2 %v1956_v0  ;;  %v1702_v35 = vld [vmem:[%s1893_s29 + $0x58] sm:$0xf0]  ;;  %v1520_v39 = vld [vmem:[%s1893_s29 + $0x38] sm:$0xf]  ;;  %v1699_v40 = vld [vmem:[%s1893_s29 + $0x40] sm:$0xf0] }
  0x34   : > { %1033 = vmatpush.bf16.msrb.mxu0 %v1661_v58  ;;  %1090 = vmatpush.bf16.msrb.mxu2 %v1971_v19  ;;  %v1517_v58 = vor.u32 %v1697_v55, %v1514_v56  ;;  %v1689_v43 = vld [vmem:[%s1940_s11 + $0x34] sm:$0xf]  ;;  %v1482_v44 = vld [vmem:[%s1940_s11 + $0x38] sm:$0xf0]  ;;  %v1508_v47 = vld [vmem:[%s1893_s29 + $0x20] sm:$0xf] }
  0x35   : > { %1004 = vmatpush.bf16.msrb.mxu3 %v1565_v15  ;;  %953 = vmatmul.bf16.vlgmr.msra.gmra.mxu1 %v1984_v30  ;;  %v1569_v15 = vor.u32 %v1711_v14, %v1568_v11  ;;  %v1485_v46 = vor.u32 %v1689_v43, %v1482_v44  ;;  %v1693_v50 = vld [vmem:[%s1893_s29 + $0x10] sm:$0xf0]  ;;  %v1690_v53 = vld [vmem:[%s1940_s11 + $0x34] sm:$0xf0] }
  0x36   : > { %1759 = vmatpush.bf16.msrb.mxu1 %v1581_v3 }
  0x38   : > { %1034 = vmatpush.bf16.msrb.mxu0 %v1649_v4  ;;  %1091 = vmatpush.bf16.msrb.mxu2 %v1980_v27  ;;  %v1694_v4 = vld [vmem:[%s1893_s29 + $0x1c] sm:$0xf] }
  0x39   : > { %1005 = vmatpush.bf16.msrb.mxu3 %v1553_v25  ;;  %v1505_v8 = vor.u32 %v1694_v4, %v1502_v5  ;;  %v1708_v25 = vld [vmem:[%s1893_s29 + $0x88] sm:$0xf0] }
  0x3a   : > { %1760 = vmatpush.bf16.msrb.mxu1 %v1569_v15  ;;  %v1557_v28 = vor.u32 %v1708_v25, %v1556_v24 }
  0x3c   : > { %1035 = vmatpush.bf16.msrb.mxu0 %v1637_v17  ;;  %1092 = vmatpush.bf16.msrb.mxu2 %v1996_v41  ;;  %v1720_v17 = vld [vmem:[%s1893_s29 + $0xe8] sm:$0xf0] }
  0x3d   : > { %1006 = vmatpush.bf16.msrb.mxu3 %v1541_v36  ;;  %v1605_v22 = vor.u32 %v1720_v17, %v1604_v16  ;;  %v1472_v36 = vld [vmem:[%s1940_s11 + $0x20] sm:$0xf] }
  0x3e   : > { %1761 = vmatpush.bf16.msrb.mxu1 %v1557_v28 }
  0x3f   : > { %526 = vmatmul.bf16.gmra.mxu0 %v1740_v37  ;;  %536 = vmatmul.bf16.gmra.mxu3 %v1742_v38  ;;  %v1688_v37 = vld [vmem:[%s1940_s11 + $0x24] sm:$0xf0]  ;;  %v1533_v38 = vor.u32 %v1702_v35, %v1532_v34 }
  0x40   : > { %1036 = vmatpush.bf16.msrb.mxu0 %v1625_v31  ;;  %1093 = vmatpush.bf16.msrb.mxu2 %v2007_v52  ;;  %v1593_v31 = vor.u32 %v1717_v29, %v1592_v26 }
  0x41   : > { %1007 = vmatpush.bf16.msrb.mxu3 %v1529_v49  ;;  %v1496_v49 = vld [vmem:[%s1893_s29 + $0x8] sm:$0xf] }
  0x43   : > { %987 = vmatmul.bf16.gmra.mxu2 %v2000_v45 }
  0x44   : > { %1037 = vmatpush.bf16.msrb.mxu0 %v1613_v42  ;;  %1094 = vmatpush.bf16.msrb.mxu2 %v2021_v2  ;;  %v1473_v42 = vor.u32 %v1688_v37, %v1472_v36 }
  0x45   : > { %1008 = vmatpush.bf16.msrb.mxu3 %v1517_v58  ;;  %958 = vmatmul.bf16.gmra.mxu1 %v2030_v12 }
  0x48   : > { %1038 = vmatpush.bf16.msrb.mxu0 %v1601_v51  ;;  %1095 = vmatpush.bf16.msrb.mxu2 %v2033_v13  ;;  %v1497_v51 = vor.u32 %v1693_v50, %v1496_v49 }
  0x49   : > { %1009 = vmatpush.bf16.msrb.mxu3 %v1505_v8 }
  0x4c   : > { %1039 = vmatpush.bf16.msrb.mxu0 %v1589_v62  ;;  %1096 = vmatpush.bf16.msrb.mxu2 %v1605_v22 }
  0x4d   : > { %1010 = vmatpush.bf16.msrb.mxu3 %v1493_v18 }
  0x4f   : > { %1040 = vmatmul.bf16.vlgmr.msrb.gmra.mxu0 %v1956_v0 }
  0x50   : > { %1061 = vmatpush.bf16.msra.mxu0 %v1581_v3  ;;  %1011 = vmatmul.bf16.vlgmr.msrb.gmra.mxu3 %v1984_v30 }
  0x51   : > { %1767 = vmatpush.bf16.msra.mxu3 %v1971_v19  ;;  %1097 = vmatpush.bf16.msrb.mxu2 %v1593_v31  ;;  %v1545_v19 = vor.u32 %v1705_v33, %v1544_v32 }
  0x53   : > { %992 = vmatmul.bf16.gmra.mxu2 %v2043_v23  ;;  %1762 = vmatpush.bf16.msrb.mxu1 %v1545_v19 }
  0x54   : > { %1062 = vmatpush.bf16.msra.mxu0 %v1569_v15 }
  0x55   : > { %1768 = vmatpush.bf16.msra.mxu3 %v1980_v27  ;;  %v1521_v27 = vor.u32 %v1699_v40, %v1520_v39  ;;  %963 = vmatmul.bf16.gmra.mxu1 %v1473_v42  ;;  %v1119_v40 = vld [vmem:[%s2361_s4] sm:$0x7] }
  0x57   : > { %1763 = vmatpush.bf16.msrb.mxu1 %v1533_v38 }
  0x58   : > { %1063 = vmatpush.bf16.msra.mxu0 %v1557_v28 }
  0x59   : > { %1769 = vmatpush.bf16.msra.mxu3 %v1996_v41  ;;  %v1696_v41 = vld [vmem:[%s1893_s29 + $0x28] sm:$0xf0] }
  0x5a   : > { %v1509_v48 = vor.u32 %v1696_v41, %v1508_v47  ;;  %v2216_v41 = vperm.slane %v1119_v40, 2 }
  0x5b   : > { %1764 = vmatpush.bf16.msrb.mxu1 %v1521_v27 }
  0x5c   : > { %1064 = vmatpush.bf16.msra.mxu0 %v1545_v19 }
  0x5d   : > { %1770 = vmatpush.bf16.msra.mxu3 %v2007_v52  ;;  %v1480_v52 = vld [vmem:[%s1940_s11 + $0x30] sm:$0xf] }
  0x5e   : > { %v1481_v54 = vor.u32 %v1690_v53, %v1480_v52  ;;  %v2221_v52 = vperm.slane %v1119_v40, 0 }
  0x5f   : > { %1045 = vmatmul.bf16.gmra.mxu0 %v2000_v45  ;;  %1765 = vmatpush.bf16.msrb.mxu1 %v1509_v48 }
  0x60   : > { %1065 = vmatpush.bf16.msra.mxu0 %v1533_v38  ;;  %1016 = vmatmul.bf16.gmra.mxu3 %v2030_v12 }
  0x61   : > { %1771 = vmatpush.bf16.msra.mxu3 %v2021_v2 }
  0x63   : > { %997 = vmatmul.bf16.gmra.mxu2 %v1485_v46  ;;  %1766 = vmatpush.bf16.msrb.mxu1 %v1497_v51 }
  0x64   : > { %1066 = vmatpush.bf16.msra.mxu0 %v1521_v27 }
  0x65   : > { %1772 = vmatpush.bf16.msra.mxu3 %v2033_v13  ;;  %968 = vmatmul.bf16.gmra.mxu1 %v1481_v54 }
  0x68   : > { %1067 = vmatpush.bf16.msra.mxu0 %v1509_v48  ;;  %v2218_v48 = vperm.slane %v1119_v40, 1 }
  0x69   : > { %1773 = vmatpush.bf16.msra.mxu3 %v1605_v22 }
  0x6c   : > { %1068 = vmatpush.bf16.msra.mxu0 %v1497_v51 }
  0x6d   : > { %1774 = vmatpush.bf16.msra.mxu3 %v1593_v31 }
  0x6f   : > { %1050 = vmatmul.bf16.gmra.mxu0 %v2043_v23 }
  0x70   : > { %1021 = vmatmul.bf16.gmra.mxu3 %v1473_v42 }
  0x73   : > { %1098 = vmatmul.bf16.vlgmr.msrb.gmra.mxu2 %v1956_v0 }
  0x75   : > { %1074 = vmatmul.bf16.vlgmr.msrb.gmra.mxu1 %v2030_v12 }
  0x7f   : > { %1055 = vmatmul.bf16.gmra.mxu0 %v1485_v46 }
  0x80   : > { %1026 = vmatmul.bf16.gmra.mxu3 %v1481_v54 }
  0x83   : > { %1103 = vmatmul.bf16.gmra.mxu2 %v2000_v45 }
  0x85   : > { %1079 = vmatmul.bf16.gmra.mxu1 %v1473_v42 }
  0x8f   : > { %1069 = vmatmul.bf16.vlgmr.msra.gmra.mxu0 %v1984_v30 }
  0x90   : > { %1113 = vmatmul.bf16.vlgmr.msra.gmra.mxu3 %v1485_v46 }
  0x93   : > { %1108 = vmatmul.bf16.gmra.mxu2 %v2043_v23 }
  0x95   : > { %1084 = vmatmul.bf16.gmra.mxu1 %v1481_v54 }
  0xac   : > { %v2081_v55 = vpop.f32.mrf.mxu0 }
  0xad   : > { %598 = vrot.lane.b32.xlu1 %v2081_v55, %s1828_s12  ;;  %574 = vrot.lane.b32.xlu2 %v2081_v55, %s1829_s13 }
  0xae   : > { %550 = vrot.lane.b32.xlu0 %v2081_v55, %s1830_s14 }
  0xb2   : > { %v2089_v0 = vpop.f32.mrf.mxu3  ;;  %v2113_v59 = vpop.f32.mrf.mxu1 }
  0xb4   : > { %v2091_v30 = vpop.f32.mrf.mxu0 }
  0xb5   : > { %558 = vrot.lane.b32.xlu2 %v2089_v0, %s1830_s14 }
  0xb6   : > { %582 = vrot.lane.b32.xlu0 %v2089_v0, %s1829_s13  ;;  %v2097_v45 = vpop.f32.mrf.mxu2 }
  0xba   : > { %v2099_v56 = vpop.f32.mrf.mxu3  ;;  %v2129_v62 = vpop.f32.mrf.mxu1 }
  0xbb   : > { %584 = vrot.lane.b32.xlu1 %v2099_v56, %s1829_s13 }
  0xbc   : > { %v2103_v57 = vpop.f32.mrf.mxu0 }
  0xbd   : > { %606 = vrot.lane.b32.xlu2 %v2089_v0, %s1828_s12 }
  0xbe   : > { %552 = vrot.lane.b32.xlu0 %v2091_v30, %s1830_s14  ;;  %v2109_v58 = vpop.f32.mrf.mxu2 }
  0xc2   : > { %v2135_v2 = vpop.f32.mrf.mxu3  ;;  %v2143_v3 = vpop.f32.mrf.mxu1 }
  0xc3   : > { %554 = vrot.lane.b32.xlu1 %v2103_v57, %s1830_s14 }
  0xc4   : > { %v2117_v60 = vpop.f32.mrf.mxu0 }
  0xc5   : > { %600 = vrot.lane.b32.xlu2 %v2091_v30, %s1828_s12 }
  0xc6   : > { %576 = vrot.lane.b32.xlu0 %v2091_v30, %s1829_s13  ;;  %v2121_v61 = vpop.f32.mrf.mxu2 }
  0xca   : > { %v2149_v6 = vpop.f32.mrf.mxu3  ;;  %v2155_v7 = vpop.f32.mrf.mxu1 }
  0xcb   : > { %578 = vrot.lane.b32.xlu1 %v2103_v57, %s1829_s13 }
  0xcc   : > { %v2131_v63 = vpop.f32.mrf.mxu0 }
  0xcd   : > { %560 = vrot.lane.b32.xlu2 %v2099_v56, %s1830_s14 }
  0xce   : > { %602 = vrot.lane.b32.xlu0 %v2103_v57, %s1828_s12  ;;  %v2133_v1 = vpop.f32.mrf.mxu2 }
  0xd2   : > { %v964_v10 = vpop.f32.mrf.mxu1 }
  0xd3   : > { %556 = vrot.lane.b32.xlu1 %v2117_v60, %s1830_s14  ;;  %v1012_v16 = vpop.f32.mrf.mxu3 }
  0xd4   : > { %v2145_v4 = vpop.f32.mrf.mxu0 }
  0xd5   : > { %586 = vrot.lane.b32.xlu2 %v2135_v2, %s1829_s13 }
  0xd6   : > { %562 = vrot.lane.b32.xlu0 %v2135_v2, %s1830_s14  ;;  %v993_v5 = vpop.f32.mrf.mxu2 }
  0xda   : > { %v2173_v13 = vpop.f32.mrf.mxu1 }
  0xdb   : > { %604 = vrot.lane.b32.xlu1 %v2117_v60, %s1828_s12  ;;  %v2183_v21 = vpop.f32.mrf.mxu3 }
  0xdc   : > { %v2157_v8 = vpop.f32.mrf.mxu0 }
  0xdd   : > { %580 = vrot.lane.b32.xlu2 %v2117_v60, %s1829_s13 }
  0xde   : > { %588 = vrot.lane.b32.xlu0 %v2149_v6, %s1829_s13  ;;  %v2161_v9 = vpop.f32.mrf.mxu2 }
  0xe2   : > { %v2179_v17 = vpop.f32.mrf.mxu1 }
  0xe3   : > { %564 = vrot.lane.b32.xlu1 %v2149_v6, %s1830_s14  ;;  %v2191_v26 = vpop.f32.mrf.mxu3 }
  0xe4   : > { %v2169_v11 = vpop.f32.mrf.mxu0 }
  0xe5   : > { %612 = vrot.lane.b32.xlu2 %v2149_v6, %s1828_s12 }
  0xe6   : > { %608 = vrot.lane.b32.xlu0 %v2099_v56, %s1828_s12  ;;  %v2171_v12 = vpop.f32.mrf.mxu2 }
  0xea   : > { %v2185_v23 = vpop.f32.mrf.mxu1 }
  0xeb   : > { %610 = vrot.lane.b32.xlu1 %v2135_v2, %s1828_s12  ;;  %v2199_v19 = vpop.f32.mrf.mxu3 }
  0xec   : > { %v2175_v14 = vpop.f32.mrf.mxu0 }
  0xee   : > { %v2177_v15 = vpop.f32.mrf.mxu2 }
  0xf2   : > { %v2195_v31 = vpop.f32.mrf.mxu1 }
  0xf3   : > { %v1022_v51 = vpop.f32.mrf.mxu3 }
  0xf4   : > { %v2181_v18 = vpop.f32.mrf.mxu0 }
  0xf6   : > { %v1099_v20 = vpop.f32.mrf.mxu2 }
  0xfa   : > { %v2203_v36 = vpop.f32.mrf.mxu1 }
  0xfc   : > { %v2187_v24 = vpop.f32.mrf.mxu0 }
  0xfe   : > { %v2189_v25 = vpop.f32.mrf.mxu2 }
 0x104   : > { %v2193_v29 = vpop.f32.mrf.mxu0 }
 0x106   : > { %v2197_v32 = vpop.f32.mrf.mxu2 }
 0x107   : > { %v575_v22 = vpop.permute.xlu2 %574 }
 0x10c   : > { %v1070_v35 = vpop.f32.mrf.mxu0 }
 0x10e   : > { %v2211_v43 = vpop.f32.mrf.mxu2 }
 0x10f   : > { %v559_v28 = vpop.permute.xlu2 %558 }
 0x110   : > { %v627_v34 = vsel %vm622_vm0, %v2089_v0, %v559_v28 }
 0x111   : > { %v965_v37 = vadd.f32 %v964_v10, %v627_v34 }
 0x113   : > { %v994_v53 = vadd.f32 %v993_v5, %v965_v37 }
 0x117   : > { %v607_v33 = vpop.permute.xlu2 %606 }
 0x11f   : > { %v599_v38 = vpop.permute.xlu1 %598  ;;  %v2205_v39 = vpop.permute.xlu2 %600 }
 0x120   : > { %v551_v42 = vpop.permute.xlu0 %550  ;;  %v641_v27 = vsel %vm640_vm1, %v575_v22, %v599_v38 }
 0x121   : > { %v623_v44 = vsel %vm622_vm0, %v2081_v55, %v551_v42  ;;  %v632_v46 = vsel %vm631_vm2, %v551_v42, %v575_v22  ;;  %v1071_v47 = vadd.f32 %v1070_v35, %v641_v27  ;;  %v1139_v35 = vadd.f32 %v2221_v52, %v994_v53 }
 0x122   : > { %v955_v49 = vadd.f32 %v2113_v59, %v623_v44  ;;  %v1013_v50 = vadd.f32 %v1012_v16, %v632_v46 }
 0x123   : > { %v1100_v54 = vadd.f32 %v1099_v20, %v1071_v47  ;;  %vm1163_vm6 = vcmp.gt.f32.partialorder %v1139_v35, 0.0 }
 0x124   : > { %v984_v0 = vadd.f32 %v2097_v45, %v955_v49  ;;  %v1042_v10 = vadd.f32 %v2131_v63, %v1013_v50  ;;  %v1080_v45 = vpop.f32.mrf.mxu1  ;;  %v1109_v49 = vpop.f32.mrf.mxu2 }
 0x125   : > { %v1129_v55 = vadd.f32 %v2216_v41, %v1100_v54 }
 0x126   : > { %v1127_v22 = vadd.f32 %v2221_v52, %v984_v0  ;;  %v1128_v34 = vadd.f32 %v2218_v48, %v1042_v10  ;;  %v1024_v10 = vpop.f32.mrf.mxu3 }
 0x127   : > { %vm1153_vm3 = vcmp.gt.f32.partialorder %v1129_v55, 0.0  ;;  %v1177_v59 = vmul.f32 0.2, %v1129_v55  ;;  %v561_v16 = vpop.permute.xlu2 %560 }
 0x128   : > { %vm1151_vm4 = vcmp.gt.f32.partialorder %v1127_v22, 0.0  ;;  %vm1152_vm5 = vcmp.gt.f32.partialorder %v1128_v34, 0.0  ;;  %v1175_v5 = vmul.f32 0.2, %v1127_v22  ;;  %v1176_v20 = vmul.f32 0.2, %v1128_v34  ;;  %v583_v37 = vpop.permute.xlu0 %582 }
 0x129   : > { %v1201_v63 = vsel %vm1153_vm3, %v1129_v55, %v1177_v59  ;;  %v636_v38 = vsel %vm631_vm2, %v559_v28, %v583_v37  ;;  %v628_v40 = vsel %vm622_vm0, %v2099_v56, %v561_v16  ;;  %v645_v42 = vsel %vm640_vm1, %v583_v37, %v607_v33 }
 0x12a   : > { %v1199_v27 = vsel %vm1151_vm4, %v1127_v22, %v1175_v5  ;;  %v1200_v44 = vsel %vm1152_vm5, %v1128_v34, %v1176_v20  ;;  %v1224_v46 = vpack.c.bf16 %v1201_v63, %v1201_v63  ;;  %v1023_v47 = vadd.f32 %v1022_v51, %v636_v38 }
 0x12b   : > { %v1223_v50 = vpack.c.bf16 %v1200_v44, %v1199_v27  ;;  %v967_v53 = vadd.f32 %v2173_v13, %v628_v40  ;;  %v1081_v54 = vadd.f32 %v1080_v45, %v645_v42  ;;  %v1187_v33 = vmul.f32 0.2, %v1139_v35 }
 0x12c   : > { %1240 = vst [vmem:[%s2233_s18 + $0x8] sm:$0xf] %v1224_v46  ;;  %v1052_v0 = vadd.f32 %v2175_v14, %v1023_v47 }
 0x12d   : > { %1239 = vst [vmem:[%s2233_s18] sm:$0xff] %v1223_v50  ;;  %v996_v28 = vadd.f32 %v2161_v9, %v967_v53  ;;  %v1110_v55 = vadd.f32 %v1109_v49, %v1081_v54  ;;  %v2244_v56 = vpop.permute.xlu1 %584  ;;  %v1211_v20 = vsel %vm1163_vm6, %v1139_v35, %v1187_v33  ;;  %v1072_v54 = vpop.f32.mrf.mxu0 }
 0x12e   : > { %v1140_v22 = vadd.f32 %v2218_v48, %v1052_v0  ;;  %v637_v51 = vsel %vm631_vm2, %v561_v16, %v2244_v56  ;;  %v2256_v46 = vpop.f32.mrf.mxu3 }
 0x12f   : > { %v1141_v13 = vadd.f32 %v2216_v41, %v1110_v55  ;;  %v1025_v34 = vadd.f32 %v1024_v10, %v637_v51  ;;  %v1142_v14 = vadd.f32 %v2221_v52, %v996_v28  ;;  %v2268_v55 = vpop.permute.xlu2 %586  ;;  %v2273_v51 = vpop.f32.mrf.mxu1 }
 0x130   : > { %vm1164_vm7 = vcmp.gt.f32.partialorder %v1140_v22, 0.0  ;;  %v1188_v59 = vmul.f32 0.2, %v1140_v22  ;;  %v553_v5 = vpop.permute.xlu0 %552 }
 0x131   : > { %vm1165_vm8 = vcmp.gt.f32.partialorder %v1141_v13, 0.0  ;;  %v1189_v9 = vmul.f32 0.2, %v1141_v13  ;;  %v1054_v45 = vadd.f32 %v2181_v18, %v1025_v34  ;;  %v624_v16 = vsel %vm622_vm0, %v2091_v30, %v553_v5 }
 0x132   : > { %v1212_v37 = vsel %vm1164_vm7, %v1140_v22, %v1188_v59  ;;  %v957_v40 = vadd.f32 %v2129_v62, %v624_v16  ;;  %v1190_v42 = vmul.f32 0.2, %v1142_v14  ;;  %vm1166_vm9 = vcmp.gt.f32.partialorder %v1142_v14, 0.0 }
 0x133   : > { %v1231_v63 = vpack.c.bf16 %v1212_v37, %v1211_v20  ;;  %v1213_v38 = vsel %vm1165_vm8, %v1141_v13, %v1189_v9  ;;  %v1143_v44 = vadd.f32 %v2218_v48, %v1054_v45 }
 0x134   : > { %v1232_v27 = vpack.c.bf16 %v1213_v38, %v1213_v38  ;;  %v986_v47 = vadd.f32 %v2109_v58, %v957_v40  ;;  %v1214_v49 = vsel %vm1166_vm9, %v1142_v14, %v1190_v42 }
 0x135   : > { %1247 = vst [vmem:[%s2233_s18 + $0x30] sm:$0xff] %v1231_v63  ;;  %v555_v35 = vpop.permute.xlu1 %554  ;;  %vm1167_vm10 = vcmp.gt.f32.partialorder %v1143_v44, 0.0  ;;  %v1191_v18 = vmul.f32 0.2, %v1143_v44 }
 0x136   : > { %1248 = vst [vmem:[%s2233_s18 + $0x38] sm:$0xf] %v1232_v27  ;;  %v625_v30 = vsel %vm622_vm0, %v2103_v57, %v555_v35  ;;  %v1130_v33 = vadd.f32 %v2221_v52, %v986_v47 }
 0x137   : > { %v1215_v62 = vsel %vm1167_vm10, %v1143_v44, %v1191_v18  ;;  %v960_v50 = vadd.f32 %v2143_v3, %v625_v30 }
 0x138   : > { %v577_v53 = vpop.permute.xlu0 %576  ;;  %v1233_v0 = vpack.c.bf16 %v1215_v62, %v1214_v49  ;;  %v1178_v14 = vmul.f32 0.2, %v1130_v33  ;;  %vm1154_vm11 = vcmp.gt.f32.partialorder %v1130_v33, 0.0  ;;  %v2293_v62 = vpop.f32.mrf.mxu1 }
 0x139   : > { %v633_v10 = vsel %vm631_vm2, %v553_v5, %v577_v53  ;;  %v642_v28 = vsel %vm640_vm1, %v577_v53, %v2205_v39  ;;  %v989_v22 = vadd.f32 %v2121_v61, %v960_v50  ;;  %v2278_v39 = vpop.f32.mrf.mxu3 }
 0x13a   : > { %1249 = vst [vmem:[%s2233_s18 + $0x3c] sm:$0xff] %v1233_v0  ;;  %v1015_v57 = vadd.f32 %v2183_v21, %v633_v10  ;;  %v1073_v58 = vadd.f32 %v1072_v54, %v642_v28  ;;  %v1202_v16 = vsel %vm1154_vm11, %v1130_v33, %v1178_v14 }
 0x13b   : > { %v1133_v61 = vadd.f32 %v2221_v52, %v989_v22 }
 0x13c   : > { %v1044_v3 = vadd.f32 %v2145_v4, %v1015_v57  ;;  %v1102_v13 = vadd.f32 %v2189_v25, %v1073_v58 }
 0x13d   : > { %v579_v34 = vpop.permute.xlu1 %578  ;;  %vm1157_vm14 = vcmp.gt.f32.partialorder %v1133_v61, 0.0 }
 0x13e   : > { %v634_v59 = vsel %vm631_vm2, %v555_v35, %v579_v34  ;;  %v1131_v5 = vadd.f32 %v2218_v48, %v1044_v3  ;;  %v1132_v9 = vadd.f32 %v2216_v41, %v1102_v13  ;;  %v581_v35 = vpop.permute.xlu2 %580 }
 0x13f   : > { %v1018_v21 = vadd.f32 %v2191_v26, %v634_v59  ;;  %v1181_v26 = vmul.f32 0.2, %v1133_v61 }
 0x140   : > { %v603_v20 = vpop.permute.xlu0 %602  ;;  %vm1155_vm12 = vcmp.gt.f32.partialorder %v1131_v5, 0.0  ;;  %v1179_v4 = vmul.f32 0.2, %v1131_v5  ;;  %vm1156_vm13 = vcmp.gt.f32.partialorder %v1132_v9, 0.0  ;;  %v1180_v25 = vmul.f32 0.2, %v1132_v9 }
 0x141   : > { %v1047_v37 = vadd.f32 %v2157_v8, %v1018_v21  ;;  %v643_v45 = vsel %vm640_vm1, %v579_v34, %v603_v20  ;;  %v2299_v10 = vpop.f32.mrf.mxu3 }
 0x142   : > { %v1203_v63 = vsel %vm1155_vm12, %v1131_v5, %v1179_v4  ;;  %v1204_v38 = vsel %vm1156_vm13, %v1132_v9, %v1180_v25  ;;  %v1076_v40 = vadd.f32 %v2195_v31, %v643_v45  ;;  %v1087_v25 = vpop.f32.mrf.mxu1 }
 0x143   : > { %v1225_v42 = vpack.c.bf16 %v1203_v63, %v1202_v16  ;;  %v1226_v27 = vpack.c.bf16 %v1204_v38, %v1204_v38  ;;  %v1134_v44 = vadd.f32 %v2218_v48, %v1047_v37 }
 0x144   : > { %v1105_v18 = vadd.f32 %v2197_v32, %v1076_v40  ;;  %v1205_v32 = vsel %vm1157_vm14, %v1133_v61, %v1181_v26 }
 0x145   : > { %v557_v30 = vpop.permute.xlu1 %556  ;;  %1241 = vst [vmem:[%s2233_s18 + $0xc] sm:$0xff] %v1225_v42  ;;  %vm1158_vm15 = vcmp.gt.f32.partialorder %v1134_v44, 0.0  ;;  %v1182_v8 = vmul.f32 0.2, %v1134_v44 }
 0x146   : > { %v626_v47 = vsel %vm622_vm0, %v2117_v60, %v557_v30  ;;  %v635_v49 = vsel %vm631_vm2, %v557_v30, %v581_v35  ;;  %1242 = vst [vmem:[%s2233_s18 + $0x14] sm:$0xf] %v1226_v27  ;;  %v1135_v31 = vadd.f32 %v2216_v41, %v1105_v18 }
 0x147   : > { %v962_v50 = vadd.f32 %v2155_v7, %v626_v47  ;;  %v1020_v53 = vadd.f32 %v2199_v19, %v635_v49  ;;  %v1206_v54 = vsel %vm1158_vm15, %v1134_v44, %v1182_v8 }
 0x148   : > { %v563_v0 = vpop.permute.xlu0 %562  ;;  %v1227_v28 = vpack.c.bf16 %v1206_v54, %v1205_v32  ;;  %vm1159_vm3 = vcmp.gt.f32.partialorder %v1135_v31, 0.0  ;;  %v1183_v60 = vmul.f32 0.2, %v1135_v31 }
 0x149   : > { %v991_v33 = vadd.f32 %v2133_v1, %v962_v50  ;;  %v1049_v57 = vadd.f32 %v2169_v11, %v1020_v53  ;;  %v629_v58 = vsel %vm622_vm0, %v2135_v2, %v563_v0  ;;  %v638_v7 = vsel %vm631_vm2, %v563_v0, %v2268_v55  ;;  %v1116_v38 = vpop.f32.mrf.mxu3 }
 0x14a   : > { %1243 = vst [vmem:[%s2233_s18 + $0x18] sm:$0xff] %v1227_v28  ;;  %v1207_v19 = vsel %vm1159_vm3, %v1135_v31, %v1183_v60  ;;  %v970_v3 = vadd.f32 %v2179_v17, %v629_v58  ;;  %v1028_v13 = vadd.f32 %v2256_v46, %v638_v7 }
 0x14b   : > { %v1136_v22 = vadd.f32 %v2221_v52, %v991_v33  ;;  %v1228_v34 = vpack.c.bf16 %v1207_v19, %v1207_v19  ;;  %v1137_v1 = vadd.f32 %v2218_v48, %v1049_v57  ;;  %v1111_v57 = vpop.f32.mrf.mxu2 }
 0x14c   : > { %v999_v11 = vadd.f32 %v2171_v12, %v970_v3  ;;  %v1057_v2 = vadd.f32 %v2187_v24, %v1028_v13  ;;  %v613_v12 = vpop.permute.xlu2 %612 }
 0x14d   : > { %vm1160_vm4 = vcmp.gt.f32.partialorder %v1136_v22, 0.0  ;;  %v1184_v59 = vmul.f32 0.2, %v1136_v22  ;;  %v605_v14 = vpop.permute.xlu1 %604  ;;  %1244 = vst [vmem:[%s2233_s18 + $0x20] sm:$0xf] %v1228_v34  ;;  %vm1161_vm5 = vcmp.gt.f32.partialorder %v1137_v1, 0.0 }
 0x14e   : > { %v1185_v5 = vmul.f32 0.2, %v1137_v1  ;;  %v644_v9 = vsel %vm640_vm1, %v581_v35, %v605_v14  ;;  %v1145_v17 = vadd.f32 %v2221_v52, %v999_v11  ;;  %v1146_v46 = vadd.f32 %v2218_v48, %v1057_v2 }
 0x14f   : > { %v1208_v21 = vsel %vm1160_vm4, %v1136_v22, %v1184_v59  ;;  %v1078_v61 = vadd.f32 %v2203_v36, %v644_v9 }
 0x150   : > { %v1209_v20 = vsel %vm1161_vm5, %v1137_v1, %v1185_v5  ;;  %v589_v4 = vpop.permute.xlu0 %588  ;;  %vm1169_vm6 = vcmp.gt.f32.partialorder %v1145_v17, 0.0  ;;  %vm1170_vm7 = vcmp.gt.f32.partialorder %v1146_v46, 0.0  ;;  %v1193_v24 = vmul.f32 0.2, %v1145_v17 }
 0x151   : > { %v1229_v37 = vpack.c.bf16 %v1209_v20, %v1208_v21  ;;  %v1194_v45 = vmul.f32 0.2, %v1146_v46  ;;  %v1107_v16 = vadd.f32 %v2211_v43, %v1078_v61  ;;  %v648_v63 = vsel %vm640_vm1, %v589_v4, %v613_v12 }
 0x152   : > { %v1217_v40 = vsel %vm1169_vm6, %v1145_v17, %v1193_v24  ;;  %v1088_v26 = vadd.f32 %v1087_v25, %v648_v63 }
 0x153   : > { %1245 = vst [vmem:[%s2233_s18 + $0x24] sm:$0xff] %v1229_v37  ;;  %v1218_v42 = vsel %vm1170_vm7, %v1146_v46, %v1194_v45  ;;  %v1138_v36 = vadd.f32 %v2216_v41, %v1107_v16 }
 0x154   : > { %v1235_v27 = vpack.c.bf16 %v1218_v42, %v1217_v40  ;;  %v1117_v44 = vadd.f32 %v1116_v38, %v1088_v26 }
 0x155   : > { %v565_v35 = vpop.permute.xlu1 %564  ;;  %vm1162_vm8 = vcmp.gt.f32.partialorder %v1138_v36, 0.0  ;;  %v1186_v18 = vmul.f32 0.2, %v1138_v36 }
 0x156   : > { %v630_v30 = vsel %vm622_vm0, %v2149_v6, %v565_v35  ;;  %v639_v43 = vsel %vm631_vm2, %v565_v35, %v589_v4  ;;  %1251 = vst [vmem:[%s2233_s18 + $0x48] sm:$0xff] %v1235_v27  ;;  %v1150_v8 = vadd.f32 %v2216_v41, %v1117_v44 }
 0x157   : > { %v972_v47 = vadd.f32 %v2185_v23, %v630_v30  ;;  %v1030_v49 = vadd.f32 %v2278_v39, %v639_v43  ;;  %v1210_v31 = vsel %vm1162_vm8, %v1138_v36, %v1186_v18 }
 0x158   : > { %v609_v50 = vpop.permute.xlu0 %608  ;;  %v1230_v53 = vpack.c.bf16 %v1210_v31, %v1210_v31  ;;  %vm1174_vm9 = vcmp.gt.f32.partialorder %v1150_v8, 0.0  ;;  %v1198_v32 = vmul.f32 0.2, %v1150_v8 }
 0x159   : > { %v1001_v54 = vadd.f32 %v2177_v15, %v972_v47  ;;  %v1059_v0 = vadd.f32 %v2193_v29, %v1030_v49  ;;  %v646_v6 = vsel %vm640_vm1, %v2244_v56, %v609_v50 }
 0x15a   : > { %1246 = vst [vmem:[%s2233_s18 + $0x2c] sm:$0xf] %v1230_v53  ;;  %v1222_v28 = vsel %vm1174_vm9, %v1150_v8, %v1198_v32  ;;  %v1083_v23 = vadd.f32 %v2273_v51, %v646_v6 }
 0x15b   : > { %v1148_v60 = vadd.f32 %v2221_v52, %v1001_v54  ;;  %v1238_v39 = vpack.c.bf16 %v1222_v28, %v1222_v28  ;;  %v1149_v33 = vadd.f32 %v2218_v48, %v1059_v0 }
 0x15c   : > { %v1112_v7 = vadd.f32 %v1111_v57, %v1083_v23 }
 0x15d   : > { %vm1172_vm0 = vcmp.gt.f32.partialorder %v1148_v60, 0.0  ;;  %v1196_v58 = vmul.f32 0.2, %v1148_v60  ;;  %v611_v15 = vpop.permute.xlu1 %610  ;;  %1254 = vst [vmem:[%s2233_s18 + $0x5c] sm:$0xf] %v1238_v39  ;;  %vm1173_vm2 = vcmp.gt.f32.partialorder %v1149_v33, 0.0 }
 0x15e   : > { %v1197_v29 = vmul.f32 0.2, %v1149_v33  ;;  %v647_v56 = vsel %vm640_vm1, %v2268_v55, %v611_v15  ;;  %v1144_v52 = vadd.f32 %v2216_v41, %v1112_v7 }
 0x15f   : > { %v1220_v19 = vsel %vm1172_vm0, %v1148_v60, %v1196_v58  ;;  %v1086_v51 = vadd.f32 %v2293_v62, %v647_v56 }
 0x160   : > { %v1221_v48 = vsel %vm1173_vm2, %v1149_v33, %v1197_v29  ;;  %vm1168_vm10 = vcmp.gt.f32.partialorder %v1144_v52, 0.0  ;;  %v1192_v3 = vmul.f32 0.2, %v1144_v52 }
 0x161   : > { %v1237_v22 = vpack.c.bf16 %v1221_v48, %v1220_v19  ;;  %v1115_v13 = vadd.f32 %v2299_v10, %v1086_v51 }
 0x162   : > { %v1216_v34 = vsel %vm1168_vm10, %v1144_v52, %v1192_v3 }
 0x163   : > { %1253 = vst [vmem:[%s2233_s18 + $0x54] sm:$0xff] %v1237_v22  ;;  %v1147_v1 = vadd.f32 %v2216_v41, %v1115_v13  ;;  %v1234_v59 = vpack.c.bf16 %v1216_v34, %v1216_v34 }
 0x165   : > { %vm1171_vm11 = vcmp.gt.f32.partialorder %v1147_v1, 0.0  ;;  %v1195_v11 = vmul.f32 0.2, %v1147_v1  ;;  %1250 = vst [vmem:[%s2233_s18 + $0x44] sm:$0xf] %v1234_v59 }
 0x167   : > { %v1219_v55 = vsel %vm1171_vm11, %v1147_v1, %v1195_v11 }
 0x168   : > { %v1236_v2 = vpack.c.bf16 %v1219_v55, %v1219_v55 }
 0x16a   : > { %1252 = vst [vmem:[%s2233_s18 + $0x50] sm:$0xf] %v1236_v2 }
 0x16b PF: > { %s15_s20 = sadd.s32 1, %s1826_s20   ;;  %s2363_s18 = smov %s1822_s19 }
 0x16c   : > { %p12_p5 = scmp.ge.s32.totalorder %s15_s20, 4   ;;  %s2364_s19 = smov %s2366_s21 }
 0x16e   :  { %14 = sbr.rel (!%p12_p5) target bundleno = 2 (0x2), region = 79 }

</bundles_post_ra>
